<compile_context>
chip_gen: v5e
topology: v5e:2x2
jax: 0.10.0
libtpu: 0.0.40
codegen_flags: <defaults>
</compile_context>

<pallas_src>
import jax
import jax.numpy as jnp
from jax.experimental import pallas as pl
from jax.experimental.pallas import tpu as pltpu


def _round_up(x, m):
    return (x + m - 1) // m * m


def dclassnet_kernel(x_ref, w1_ref, b1_ref, w2_ref, b2_ref, out_ref):
    # x_ref: (TB, D_in) bf16   w1_ref: (D_in, H_pad) bf16   b1_ref: (1, H_pad) f32
    # w2_ref: (H_pad, C_pad) bf16   b2_ref: (1, C_pad) f32 (padded lanes = -1e30)
    # out_ref: (TB, C_pad) f32
    x = x_ref[...]
    # Layer 1: MXU matmul (bf16 operands, f32 accumulation), bias + ReLU in f32.
    h = jnp.dot(x, w1_ref[...], preferred_element_type=jnp.float32)
    h = jnp.maximum(h + b1_ref[...], 0.0)
    # Layer 2: cast activations back to bf16 for the MXU, accumulate in f32.
    logits = jnp.dot(h.astype(jnp.bfloat16), w2_ref[...],
                     preferred_element_type=jnp.float32)
    logits = logits + b2_ref[...]            # padded classes become ~-1e30
    # Numerically stable log-softmax over the (lane-dense) class axis.
    m = jnp.max(logits, axis=-1, keepdims=True)
    shifted = logits - m
    lse = jnp.log(jnp.sum(jnp.exp(shifted), axis=-1, keepdims=True))
    out_ref[...] = shifted - lse


def dclassnet_forward(x, w1, b1, w2, b2, *, tile_b=256):
    """x: (B, net_inputs) f32. w1: (net_inputs, hidden), b1: (hidden,) or (1, hidden),
    w2: (hidden, num_classes), b2: (num_classes,) or (1, num_classes).
    Returns (B, num_classes) f32 log-probabilities."""
    B, d_in = x.shape
    hidden, num_classes = w2.shape
    h_pad = _round_up(hidden, 128)
    c_pad = _round_up(num_classes, 128)

    # --- lane/sublane-dense parameter padding (wrapper-side, cheap XLA work) ---
    w1p = jnp.zeros((d_in, h_pad), jnp.bfloat16)
    w1p = w1p.at[:, :hidden].set(w1.astype(jnp.bfloat16))
    b1p = jnp.zeros((1, h_pad), jnp.float32)
    b1p = b1p.at[:, :hidden].set(b1.reshape(1, -1).astype(jnp.float32))
    w2p = jnp.zeros((h_pad, c_pad), jnp.bfloat16)
    w2p = w2p.at[:hidden, :num_classes].set(w2.astype(jnp.bfloat16))
    # Padded class logits must not participate in log-softmax -> huge negative bias.
    b2p = jnp.full((1, c_pad), -1e30, jnp.float32)
    b2p = b2p.at[:, :num_classes].set(b2.reshape(1, -1).astype(jnp.float32))

    # --- batch tiling (sublane-aligned, padded to a whole number of tiles) ---
    tb = min(tile_b, _round_up(B, 8))
    b_pad = _round_up(B, tb)
    xp = x.astype(jnp.bfloat16)
    if b_pad != B:
        xp = jnp.pad(xp, ((0, b_pad - B), (0, 0)))

    grid = (b_pad // tb,)
    out = pl.pallas_call(
        dclassnet_kernel,
        out_shape=jax.ShapeDtypeStruct((b_pad, c_pad), jnp.float32),
        grid_spec=pltpu.PrefetchScalarGridSpec(
            num_scalar_prefetch=0,
            grid=grid,
            in_specs=[
                pl.BlockSpec((tb, d_in), lambda i: (i, 0)),      # x: tiled over batch
                pl.BlockSpec((d_in, h_pad), lambda i: (0, 0)),   # w1: resident
                pl.BlockSpec((1, h_pad), lambda i: (0, 0)),      # b1: resident
                pl.BlockSpec((h_pad, c_pad), lambda i: (0, 0)),  # w2: resident
                pl.BlockSpec((1, c_pad), lambda i: (0, 0)),      # b2: resident
            ],
            out_specs=pl.BlockSpec((tb, c_pad), lambda i: (i, 0)),
        ),
        compiler_params=pltpu.CompilerParams(
            dimension_semantics=("parallel",),
        ),
    )(xp, w1p, b1p, w2p, b2p)

    # Strip batch padding and fake (padded) classes.
    return out[:B, :num_classes]


def init_params(key, net_inputs, num_classes, hidden=1000):
    """PyTorch nn.Linear-style init (uniform +/- 1/sqrt(fan_in)).
    Weights stored as (in_features, out_features); biases as (out_features,)."""
    k1, k2, k3, k4 = jax.random.split(key, 4)
    bound1 = 1.0 / jnp.sqrt(net_inputs)
    bound2 = 1.0 / jnp.sqrt(hidden)
    w1 = jax.random.uniform(k1, (net_inputs, hidden), jnp.float32, -bound1, bound1)
    b1 = jax.random.uniform(k2, (hidden,), jnp.float32, -bound1, bound1)
    w2 = jax.random.uniform(k3, (hidden, num_classes), jnp.float32, -bound2, bound2)
    b2 = jax.random.uniform(k4, (num_classes,), jnp.float32, -bound2, bound2)
    return w1, b1, w2, b2


if __name__ == "__main__":
    key = jax.random.PRNGKey(0)
    kx, kp = jax.random.split(key)

    batch = 8
    net_inputs = 32
    num_classes = 10

    x = jax.random.normal(kx, (batch, net_inputs), jnp.float32)
    w1, b1, w2, b2 = init_params(kp, net_inputs, num_classes)

    out = dclassnet_forward(x, w1, b1, w2, b2)
    jax.block_until_ready(out)
    assert out.shape == (batch, num_classes)

    # Reference 1: same bf16 matmul / f32 epilogue math in pure JAX.
    xb = x.astype(jnp.bfloat16)
    h_ref = jnp.maximum(
        jnp.dot(xb, w1.astype(jnp.bfloat16), preferred_element_type=jnp.float32)
        + b1[None, :], 0.0)
    logits_ref = jnp.dot(h_ref.astype(jnp.bfloat16), w2.astype(jnp.bfloat16),
                         preferred_element_type=jnp.float32) + b2[None, :]
    ref_bf16 = jax.nn.log_softmax(logits_ref, axis=1)
    assert jnp.allclose(out, ref_bf16, atol=2e-3, rtol=2e-3), "mismatch vs bf16 reference"

    # Reference 2: full-f32 reference (looser tolerance due to bf16 operands).
    h32 = jnp.maximum(x @ w1 + b1[None, :], 0.0)
    ref_f32 = jax.nn.log_softmax(h32 @ w2 + b2[None, :], axis=1)
    assert jnp.allclose(out, ref_f32, atol=5e-2, rtol=5e-2), "mismatch vs f32 reference"

    print("KERNEL_OK")
</pallas_src>

<mosaic_0001>
module attributes {stable_mosaic.version = 11 : i64} {
  func.func @dclassnet_kernel(%arg0: i32, %arg1: memref<8x32xbf16, #tpu.memory_space<vmem>>, %arg2: memref<32x1024xbf16, #tpu.memory_space<vmem>>, %arg3: memref<1x1024xf32, #tpu.memory_space<vmem>>, %arg4: memref<1024x128xbf16, #tpu.memory_space<vmem>>, %arg5: memref<1x128xf32, #tpu.memory_space<vmem>>, %arg6: memref<8x128xf32, #tpu.memory_space<vmem>>) attributes {dimension_semantics = [#tpu.dimension_semantics<parallel>], iteration_bounds = array<i64: 1>, scalar_prefetch = 0 : i64, scratch_operands = 0 : i64, tpu.core_type = #tpu.core_type<tc>, window_params = [{transform_indices = @transform_0, window_bounds = array<i64: 8, 32>}, {pipeline_mode = #tpu.pipeline_mode<synchronous>, transform_indices = @transform_1, window_bounds = array<i64: 32, 1024>}, {pipeline_mode = #tpu.pipeline_mode<synchronous>, transform_indices = @transform_2, window_bounds = array<i64: 1, 1024>}, {pipeline_mode = #tpu.pipeline_mode<synchronous>, transform_indices = @transform_3, window_bounds = array<i64: 1024, 128>}, {pipeline_mode = #tpu.pipeline_mode<synchronous>, transform_indices = @transform_4, window_bounds = array<i64: 1, 128>}, {transform_indices = @transform_5, window_bounds = array<i64: 8, 128>}]} {
    %c0 = arith.constant 0 : index
    %c0_0 = arith.constant 0 : index
    %0 = vector.load %arg1[%c0, %c0_0] : memref<8x32xbf16, #tpu.memory_space<vmem>>, vector<8x32xbf16>
    %c0_1 = arith.constant 0 : index
    %c0_2 = arith.constant 0 : index
    %1 = vector.load %arg2[%c0_1, %c0_2] : memref<32x1024xbf16, #tpu.memory_space<vmem>>, vector<32x1024xbf16>
    %cst = arith.constant dense<0.000000e+00> : vector<8x1024xf32>
    %2 = tpu.matmul %0, %1, %cst {dimension_numbers = #tpu.dot_dimension_numbers<[1], [0], [0], [1], [0, 0, 1, 1], [], []>} : vector<8x32xbf16>, vector<32x1024xbf16>, vector<8x1024xf32> -> vector<8x1024xf32>
    %c0_3 = arith.constant 0 : index
    %c0_4 = arith.constant 0 : index
    %3 = vector.load %arg3[%c0_3, %c0_4] : memref<1x1024xf32, #tpu.memory_space<vmem>>, vector<1x1024xf32>
    %4 = vector.broadcast %3 : vector<1x1024xf32> to vector<8x1024xf32>
    %5 = arith.addf %2, %4 : vector<8x1024xf32>
    %cst_5 = arith.constant 0.000000e+00 : f32
    %6 = vector.broadcast %cst_5 : f32 to vector<8x1024xf32>
    %7 = arith.maximumf %5, %6 : vector<8x1024xf32>
    %8 = arith.truncf %7 : vector<8x1024xf32> to vector<8x1024xbf16>
    %c0_6 = arith.constant 0 : index
    %c0_7 = arith.constant 0 : index
    %9 = vector.load %arg4[%c0_6, %c0_7] : memref<1024x128xbf16, #tpu.memory_space<vmem>>, vector<1024x128xbf16>
    %cst_8 = arith.constant dense<0.000000e+00> : vector<8x128xf32>
    %10 = tpu.matmul %8, %9, %cst_8 {dimension_numbers = #tpu.dot_dimension_numbers<[1], [0], [0], [1], [0, 0, 1, 1], [], []>} : vector<8x1024xbf16>, vector<1024x128xbf16>, vector<8x128xf32> -> vector<8x128xf32>
    %c0_9 = arith.constant 0 : index
    %c0_10 = arith.constant 0 : index
    %11 = vector.load %arg5[%c0_9, %c0_10] : memref<1x128xf32, #tpu.memory_space<vmem>>, vector<1x128xf32>
    %12 = vector.broadcast %11 : vector<1x128xf32> to vector<8x128xf32>
    %13 = arith.addf %10, %12 : vector<8x128xf32>
    %cst_11 = arith.constant dense<0xFF800000> : vector<8xf32>
    %14 = vector.multi_reduction <maximumf>, %13, %cst_11 [1] : vector<8x128xf32> to vector<8xf32>
    %15 = vector.shape_cast %14 : vector<8xf32> to vector<8x1xf32>
    %16 = vector.broadcast %15 : vector<8x1xf32> to vector<8x128xf32>
    %17 = arith.subf %13, %16 : vector<8x128xf32>
    %18 = math.exp %17 : vector<8x128xf32>
    %cst_12 = arith.constant dense<0.000000e+00> : vector<8xf32>
    %19 = vector.multi_reduction <add>, %18, %cst_12 [1] : vector<8x128xf32> to vector<8xf32>
    %20 = vector.shape_cast %19 : vector<8xf32> to vector<8x1xf32>
    %21 = math.log %20 : vector<8x1xf32>
    %22 = vector.broadcast %21 : vector<8x1xf32> to vector<8x128xf32>
    %23 = arith.subf %17, %22 : vector<8x128xf32>
    %c0_13 = arith.constant 0 : index
    %c0_14 = arith.constant 0 : index
    %24 = vector.load %arg6[%c0_13, %c0_14] : memref<8x128xf32, #tpu.memory_space<vmem>>, vector<8x128xf32>
    tpu.vector_store %arg6[%c0_13, %c0_14], %23 {strides = array<i32>} : memref<8x128xf32, #tpu.memory_space<vmem>>, vector<8x128xf32>,
    return
  }
  func.func @transform_0(%arg0: i32) -> (i32, i32) {
    %c0_i32 = arith.constant 0 : i32
    %c0_i32_0 = arith.constant 0 : i32
    return %arg0, %c0_i32 : i32, i32
  }
  func.func @transform_1(%arg0: i32) -> (i32, i32) {
    %c0_i32 = arith.constant 0 : i32
    %c0_i32_0 = arith.constant 0 : i32
    %c0_i32_1 = arith.constant 0 : i32
    return %c0_i32, %c0_i32_0 : i32, i32
  }
  func.func @transform_2(%arg0: i32) -> (i32, i32) {
    %c0_i32 = arith.constant 0 : i32
    %c0_i32_0 = arith.constant 0 : i32
    %c0_i32_1 = arith.constant 0 : i32
    return %c0_i32, %c0_i32_0 : i32, i32
  }
  func.func @transform_3(%arg0: i32) -> (i32, i32) {
    %c0_i32 = arith.constant 0 : i32
    %c0_i32_0 = arith.constant 0 : i32
    %c0_i32_1 = arith.constant 0 : i32
    return %c0_i32, %c0_i32_0 : i32, i32
  }
  func.func @transform_4(%arg0: i32) -> (i32, i32) {
    %c0_i32 = arith.constant 0 : i32
    %c0_i32_0 = arith.constant 0 : i32
    %c0_i32_1 = arith.constant 0 : i32
    return %c0_i32, %c0_i32_0 : i32, i32
  }
  func.func @transform_5(%arg0: i32) -> (i32, i32) {
    %c0_i32 = arith.constant 0 : i32
    %c0_i32_0 = arith.constant 0 : i32
    return %arg0, %c0_i32 : i32, i32
  }
}

</mosaic_0001>

<bundles_post_ra>
// kernel: tpu_custom_call.1
= control target key start
LH: loop header
LB: loop body
LE: loop exit
PB: predicated region body
PF: predicated region fallthrough
CT: control target
= control target key end

     0   :  { %10 = vsyncpa [#allocation3], 0  ;;  %s1595_s0 = inlined_call_operand.hbm [shape: bf16[8,32], index: 0, kind: input, shape index: {}]   ;;  %s1596_s1 = inlined_call_operand.hbm [shape: bf16[32,1024], index: 1, kind: input, shape index: {}]   ;;  %s1597_s2 = inlined_call_operand.hbm [shape: f32[1,1024], index: 2, kind: input, shape index: {}]   ;;  %s1598_s3 = inlined_call_operand.hbm [shape: bf16[1024,128], index: 3, kind: input, shape index: {}]   ;;  %s1599_s4 = inlined_call_operand.vmem [shape: f32[1,128], index: 4, kind: input, shape index: {}]   ;;  %s1600_s5 = inlined_call_operand.hbm [shape: f32[8,128], index: 5, kind: output, shape index: {}]  }
   0x1   :  { %11 = vsyncpa [#allocation6], 0 }
   0x2   :  { %12 = vsyncpa [#allocation9], 0  ;;  %s29_s20 = sshll.u32 %s1596_s1, 4  ;;  %s30_s20 = int_to_ptr.hbm [resolvable:$true] %s29_s20 }
   0x3   :  { %13 = vsyncpa [#allocation4], 0  ;;  %s1520_s21 = smov [#allocation5]   ;;  %s19_s25 = sshll.u32 %s1595_s0, 4  ;;  %s20_s25 = int_to_ptr.hbm [resolvable:$true] %s19_s25 }
   0x4   :  { %s31_s22 = sshll.u32 %s1520_s21, 4  ;;  %s1521_s26 = smov 512   ;;  %s32_s22 = int_to_ptr.vmem [resolvable:$true] %s31_s22 }
   0x5   :  { %s1522_s27 = smov 32   ;;  %s1523_s28 = smov [#allocation2]  }
   0x6   :  { %37 = dma.hbm_to_vmem [thread:$0]  %s30_s20, 2048, %s32_s22, [#allocation6], %s1521_s26, %s1521_s26, %s1522_s27  }
   0x7   :  { %s21_s29 = sshll.u32 %s1523_s28, 4  ;;  %s43_s7 = sshll.u32 %s1597_s2, 4  ;;  %s22_s29 = int_to_ptr.vmem [resolvable:$true] %s21_s29  ;;  %s44_s7 = int_to_ptr.hbm [resolvable:$true] %s43_s7 }
   0x8   :  { %24 = dma.hbm_to_vmem [thread:$0]  %s20_s25, 64, %s22_s29, [#allocation3]  }
   0x9   :  { %s53_s9 = sshll.u32 %s1598_s3, 4  ;;  %s1524_s10 = smov [#allocation7]   ;;  %s54_s9 = int_to_ptr.hbm [resolvable:$true] %s53_s9 }
   0xa   :  { %s45_s11 = sshll.u32 %s1524_s10, 4  ;;  %s1525_s0 = smov [#allocation8]   ;;  %s46_s11 = int_to_ptr.vmem [resolvable:$true] %s45_s11 }
   0xb   :  { %48 = dma.hbm_to_vmem [thread:$0]  %s44_s7, 128, %s46_s11, [#allocation6]  }
   0xc   :  { %s55_s12 = sshll.u32 %s1525_s0, 4  ;;  %s1526_s13 = smov 64   ;;  %s56_s12 = int_to_ptr.vmem [resolvable:$true] %s55_s12 }
   0xd   :  { %s1527_s14 = smov 4  }
   0xe   :  { %61 = dma.hbm_to_vmem [thread:$0]  %s54_s9, 8192, %s56_s12, [#allocation9], %s1526_s13, %s1526_s13, %s1527_s14  }
   0xf   :  { %1512 = dma.done.wait [#allocation3], 64  }
  0x10   :  { %1513 = vsyncadd [#allocation3], 4294967232 }
  0x11   :  { %1514 = dma.done.wait [#allocation6], 2176  }
  0x12   :  { %1515 = vsyncadd [#allocation6], 4294965120 }
  0x13   :  { %1516 = dma.done.wait [#allocation9], 8192  }
  0x14   :  { %1517 = vsyncadd [#allocation9], 4294959104  ;;  %vm196_vm0 = vcmask 261120   ;;  %v1004_v0 = vld [vmem:[#allocation5 + $0x40] sm:$0xf]  ;;  %v1336_v53 = vld [vmem:[#allocation8 + $0xb0] sm:$0xff] }
  0x15   :  { %v1310_v1 = vld [vmem:[#allocation5 + $0x5c] sm:$0xf0]  ;;  %v1012_v2 = vld [vmem:[#allocation5 + $0x48] sm:$0xf]  ;;  %v1307_v5 = vld [vmem:[#allocation5 + $0x4c] sm:$0xf] }
  0x16   :  { %v1005_v3 = vor.u32 %v1310_v1, %v1004_v0  ;;  %v1311_v4 = vld [vmem:[#allocation5 + $0x64] sm:$0xf0]  ;;  %v1014_v6 = vld [vmem:[#allocation5 + $0x68] sm:$0xf0]  ;;  %v1306_v9 = vld [vmem:[#allocation5 + $0x44] sm:$0xf] }
  0x17   :  { %v1013_v7 = vor.u32 %v1311_v4, %v1012_v2  ;;  %v1017_v8 = vor.u32 %v1307_v5, %v1014_v6  ;;  %v1006_v10 = vld [vmem:[#allocation5 + $0x60] sm:$0xf0]  ;;  %v972_v11 = vld [vmem:[#allocation5] sm:$0xf]  ;;  %v980_v14 = vld [vmem:[#allocation5 + $0x8] sm:$0xf] }
  0x18   :  { %206 = vmatpush.bf16.msra.mxu0 %v1005_v3  ;;  %v1009_v12 = vor.u32 %v1306_v9, %v1006_v10  ;;  %v1302_v13 = vld [vmem:[#allocation5 + $0x1c] sm:$0xf0]  ;;  %v1303_v15 = vld [vmem:[#allocation5 + $0x24] sm:$0xf0]  ;;  %v1299_v18 = vld [vmem:[#allocation5 + $0xc] sm:$0xf] }
  0x19   :  { %232 = vmatpush.bf16.msra.mxu2 %v1013_v7  ;;  %245 = vmatpush.bf16.msra.mxu3 %v1017_v8  ;;  %v973_v16 = vor.u32 %v1302_v13, %v972_v11  ;;  %v981_v17 = vor.u32 %v1303_v15, %v980_v14  ;;  %v982_v19 = vld [vmem:[#allocation5 + $0x28] sm:$0xf0]  ;;  %v1298_v20 = vld [vmem:[#allocation5 + $0x4] sm:$0xf]  ;;  %v1571_v23 = vld [vmem:[#allocation2] sm:$0xf] }
  0x1a   :  { %219 = vmatpush.bf16.msra.mxu1 %v1009_v12  ;;  %v985_v21 = vor.u32 %v1299_v18, %v982_v19  ;;  %v974_v22 = vld [vmem:[#allocation5 + $0x20] sm:$0xf0]  ;;  %v1028_v24 = vld [vmem:[#allocation5 + $0x58] sm:$0xf]  ;;  %v1309_v27 = vld [vmem:[#allocation5 + $0x5c] sm:$0xf] }
  0x1b   :  { %v977_v25 = vor.u32 %v1298_v20, %v974_v22  ;;  %v1313_v26 = vld [vmem:[#allocation5 + $0x74] sm:$0xf0]  ;;  %v1030_v28 = vld [vmem:[#allocation5 + $0x78] sm:$0xf0]  ;;  %v1020_v31 = vld [vmem:[#allocation5 + $0x50] sm:$0xf] }
  0x1c   :  { %207 = vmatpush.bf16.msra.mxu0 %v973_v16  ;;  %v1029_v29 = vor.u32 %v1313_v26, %v1028_v24  ;;  %v1033_v30 = vor.u32 %v1309_v27, %v1030_v28  ;;  %v1312_v32 = vld [vmem:[#allocation5 + $0x6c] sm:$0xf0]  ;;  %v996_v33 = vld [vmem:[#allocation5 + $0x18] sm:$0xf]  ;;  %v1308_v36 = vld [vmem:[#allocation5 + $0x54] sm:$0xf] }
  0x1d   :  { %233 = vmatpush.bf16.msra.mxu2 %v981_v17  ;;  %246 = vmatpush.bf16.msra.mxu3 %v985_v21  ;;  %v1021_v34 = vor.u32 %v1312_v32, %v1020_v31  ;;  %v1305_v35 = vld [vmem:[#allocation5 + $0x34] sm:$0xf0]  ;;  %v1022_v37 = vld [vmem:[#allocation5 + $0x70] sm:$0xf0]  ;;  %v1301_v40 = vld [vmem:[#allocation5 + $0x1c] sm:$0xf] }
  0x1e   :  { %220 = vmatpush.bf16.msra.mxu1 %v977_v25  ;;  %v997_v38 = vor.u32 %v1305_v35, %v996_v33  ;;  %v1025_v39 = vor.u32 %v1308_v36, %v1022_v37  ;;  %v998_v41 = vld [vmem:[#allocation5 + $0x38] sm:$0xf0]  ;;  %v988_v42 = vld [vmem:[#allocation5 + $0x10] sm:$0xf]  ;;  %v1300_v45 = vld [vmem:[#allocation5 + $0x14] sm:$0xf] }
  0x1f   :  { %1034 = vmatmul.msk.bf16.vlgmr.msra.gmra.mxu0 %vm196_vm0, %v1571_v23  ;;  %v1001_v43 = vor.u32 %v1301_v40, %v998_v41  ;;  %v1304_v44 = vld [vmem:[#allocation5 + $0x2c] sm:$0xf0]  ;;  %v990_v46 = vld [vmem:[#allocation5 + $0x30] sm:$0xf0]  ;;  %v1337_v48 = vld [vmem:[#allocation8 + $0xb8] sm:$0xff]  ;;  %s958_s18 = sshll.u32 %s1600_s5, 4  ;;  %s959_s18 = int_to_ptr.hbm [resolvable:$true] %s958_s18 }
  0x20   :  { %1036 = vmatmul.msk.bf16.vlgmr.msra.gmra.mxu2 %vm196_vm0, %v1571_v23  ;;  %1037 = vmatmul.msk.bf16.vlgmr.msra.gmra.mxu3 %vm196_vm0, %v1571_v23  ;;  %v989_v47 = vor.u32 %v1304_v44, %v988_v42  ;;  %v1345_v49 = vld [vmem:[#allocation8 + $0xf8] sm:$0xff]  ;;  %v993_v50 = vor.u32 %v1300_v45, %v990_v46  ;;  %v1344_v54 = vld [vmem:[#allocation8 + $0xf0] sm:$0xff]  ;;  %v1335_v57 = vld [vmem:[#allocation8 + $0xa8] sm:$0xff] }
  0x21   :  { %284 = vmatpush.bf16.msrb.mxu2 %v1029_v29  ;;  %297 = vmatpush.bf16.msrb.mxu3 %v1033_v30  ;;  %v1321_v51 = vld [vmem:[#allocation8 + $0x38] sm:$0xff]  ;;  %v1320_v55 = vld [vmem:[#allocation8 + $0x30] sm:$0xff]  ;;  %v1343_v58 = vld [vmem:[#allocation8 + $0xe8] sm:$0xff] }
  0x22   :  { %1035 = vmatmul.msk.bf16.vlgmr.msra.gmra.mxu1 %vm196_vm0, %v1571_v23  ;;  %258 = vmatpush.bf16.msrb.mxu0 %v1021_v34  ;;  %v1329_v52 = vld [vmem:[#allocation8 + $0x78] sm:$0xff]  ;;  %v1328_v56 = vld [vmem:[#allocation8 + $0x70] sm:$0xff]  ;;  %v1319_v59 = vld [vmem:[#allocation8 + $0x28] sm:$0xff] }
  0x23   :  { %271 = vmatpush.bf16.msrb.mxu1 %v1025_v39  ;;  %v1327_v60 = vld [vmem:[#allocation8 + $0x68] sm:$0xff]  ;;  %v1334_v61 = vld [vmem:[#allocation8 + $0xa0] sm:$0xff]  ;;  %v1333_v1 = vld [vmem:[#allocation8 + $0x98] sm:$0xff] }
  0x24   :  { %v1318_v62 = vld [vmem:[#allocation8 + $0x20] sm:$0xff]  ;;  %v1317_v2 = vld [vmem:[#allocation8 + $0x18] sm:$0xff]  ;;  %v1332_v5 = vld [vmem:[#allocation8 + $0x90] sm:$0xff] }
  0x25   :  { %285 = vmatpush.bf16.msrb.mxu2 %v997_v38  ;;  %298 = vmatpush.bf16.msrb.mxu3 %v1001_v43  ;;  %v1342_v63 = vld [vmem:[#allocation8 + $0xe0] sm:$0xff]  ;;  %v1341_v3 = vld [vmem:[#allocation8 + $0xd8] sm:$0xff]  ;;  %v1316_v6 = vld [vmem:[#allocation8 + $0x10] sm:$0xff] }
  0x26   :  { %259 = vmatpush.bf16.msrb.mxu0 %v989_v47  ;;  %v1326_v0 = vld [vmem:[#allocation8 + $0x60] sm:$0xff]  ;;  %v1325_v4 = vld [vmem:[#allocation8 + $0x58] sm:$0xff]  ;;  %v1340_v7 = vld [vmem:[#allocation8 + $0xd0] sm:$0xff] }
  0x27   :  { %272 = vmatpush.bf16.msrb.mxu1 %v993_v50  ;;  %v1324_v8 = vld [vmem:[#allocation8 + $0x50] sm:$0xff]  ;;  %v1331_v9 = vld [vmem:[#allocation8 + $0x88] sm:$0xff]  ;;  %v1330_v13 = vld [vmem:[#allocation8 + $0x80] sm:$0xff] }
  0x28   :  { %v1315_v10 = vld [vmem:[#allocation8 + $0x8] sm:$0xff]  ;;  %v1314_v14 = vld [vmem:[#allocation8] sm:$0xff]  ;;  %v1353_v16 = vld [vmem:[#allocation8 + $0x138] sm:$0xff] }
  0x29   :  { %862 = vmatpush.bf16.msra.mxu2 %v1337_v48  ;;  %875 = vmatpush.bf16.msra.mxu3 %v1345_v49  ;;  %v1339_v11 = vld [vmem:[#allocation8 + $0xc8] sm:$0xff]  ;;  %v1338_v15 = vld [vmem:[#allocation8 + $0xc0] sm:$0xff]  ;;  %v1361_v18 = vld [vmem:[#allocation8 + $0x178] sm:$0xff] }
  0x2a   :  { %836 = vmatpush.bf16.msra.mxu0 %v1321_v51  ;;  %v1323_v12 = vld [vmem:[#allocation8 + $0x48] sm:$0xff]  ;;  %v1322_v17 = vld [vmem:[#allocation8 + $0x40] sm:$0xff]  ;;  %v1369_v19 = vld [vmem:[#allocation8 + $0x1b8] sm:$0xff] }
  0x2b   :  { %849 = vmatpush.bf16.msra.mxu1 %v1329_v52  ;;  %v1377_v20 = vld [vmem:[#allocation8 + $0x1f8] sm:$0xff]  ;;  %v1352_v21 = vld [vmem:[#allocation8 + $0x130] sm:$0xff]  ;;  %v1359_v24 = vld [vmem:[#allocation8 + $0x168] sm:$0xff] }
  0x2c   :  { %v1360_v22 = vld [vmem:[#allocation8 + $0x170] sm:$0xff]  ;;  %v1350_v27 = vld [vmem:[#allocation8 + $0x120] sm:$0xff]  ;;  %v1367_v29 = vld [vmem:[#allocation8 + $0x1a8] sm:$0xff] }
  0x2d   :  { %863 = vmatpush.bf16.msra.mxu2 %v1336_v53  ;;  %876 = vmatpush.bf16.msra.mxu3 %v1344_v54  ;;  %v1368_v25 = vld [vmem:[#allocation8 + $0x1b0] sm:$0xff]  ;;  %v1358_v28 = vld [vmem:[#allocation8 + $0x160] sm:$0xff]  ;;  %v1375_v30 = vld [vmem:[#allocation8 + $0x1e8] sm:$0xff] }
  0x2e   :  { %837 = vmatpush.bf16.msra.mxu0 %v1320_v55  ;;  %v1376_v26 = vld [vmem:[#allocation8 + $0x1f0] sm:$0xff]  ;;  %v1349_v31 = vld [vmem:[#allocation8 + $0x118] sm:$0xff]  ;;  %v1366_v33 = vld [vmem:[#allocation8 + $0x1a0] sm:$0xff] }
  0x2f   :  { %850 = vmatpush.bf16.msra.mxu1 %v1328_v56  ;;  %1038 = vmatmul.msk.bf16.vlgmr.msrb.gmra.mxu0 %vm196_vm0, %v1571_v23  ;;  %v1357_v32 = vld [vmem:[#allocation8 + $0x158] sm:$0xff]  ;;  %v1374_v34 = vld [vmem:[#allocation8 + $0x1e0] sm:$0xff]  ;;  %v1348_v35 = vld [vmem:[#allocation8 + $0x110] sm:$0xff] }
  0x30   :  { %1040 = vmatmul.msk.bf16.vlgmr.msrb.gmra.mxu2 %vm196_vm0, %v1571_v23  ;;  %1041 = vmatmul.msk.bf16.vlgmr.msrb.gmra.mxu3 %vm196_vm0, %v1571_v23  ;;  %v1356_v36 = vld [vmem:[#allocation8 + $0x150] sm:$0xff]  ;;  %v1365_v37 = vld [vmem:[#allocation8 + $0x198] sm:$0xff]  ;;  %v1347_v39 = vld [vmem:[#allocation8 + $0x108] sm:$0xff] }
  0x31   :  { %864 = vmatpush.bf16.msra.mxu2 %v1335_v57  ;;  %877 = vmatpush.bf16.msra.mxu3 %v1343_v58  ;;  %v1373_v38 = vld [vmem:[#allocation8 + $0x1d8] sm:$0xff]  ;;  %v1355_v40 = vld [vmem:[#allocation8 + $0x148] sm:$0xff]  ;;  %v1364_v41 = vld [vmem:[#allocation8 + $0x190] sm:$0xff] }
  0x32   :  { %838 = vmatpush.bf16.msra.mxu0 %v1319_v59  ;;  %1039 = vmatmul.msk.bf16.vlgmr.msrb.gmra.mxu1 %vm196_vm0, %v1571_v23  ;;  %v1351_v23 = vld [vmem:[#allocation8 + $0x128] sm:$0xff]  ;;  %v1372_v42 = vld [vmem:[#allocation8 + $0x1d0] sm:$0xff]  ;;  %v1346_v43 = vld [vmem:[#allocation8 + $0x100] sm:$0xff] }
  0x33   :  { %851 = vmatpush.bf16.msra.mxu1 %v1327_v60  ;;  %v1354_v44 = vld [vmem:[#allocation8 + $0x140] sm:$0xff]  ;;  %v1363_v45 = vld [vmem:[#allocation8 + $0x188] sm:$0xff]  ;;  %v98_v49 = vld [vmem:[#allocation7] sm:$0xff] }
  0x34   :  { %v1371_v46 = vld [vmem:[#allocation8 + $0x1c8] sm:$0xff]  ;;  %v1362_v47 = vld [vmem:[#allocation8 + $0x180] sm:$0xff]  ;;  %v100_v50 = vperm.slane %v98_v49, 0  ;;  %v101_v51 = vperm.slane %v98_v49, 1  ;;  %v102_v57 = vperm.slane %v98_v49, 2  ;;  %v103_v58 = vperm.slane %v98_v49, 3 }
  0x35   :  { %865 = vmatpush.bf16.msra.mxu2 %v1334_v61  ;;  %878 = vmatpush.bf16.msra.mxu3 %v1342_v63  ;;  %v1370_v48 = vld [vmem:[#allocation8 + $0x1c0] sm:$0xff] }
  0x36   :  { %839 = vmatpush.bf16.msra.mxu0 %v1318_v62 }
  0x37   :  { %852 = vmatpush.bf16.msra.mxu1 %v1326_v0 }
  0x39   :  { %866 = vmatpush.bf16.msra.mxu2 %v1333_v1  ;;  %879 = vmatpush.bf16.msra.mxu3 %v1341_v3 }
  0x3a   :  { %840 = vmatpush.bf16.msra.mxu0 %v1317_v2 }
  0x3b   :  { %853 = vmatpush.bf16.msra.mxu1 %v1325_v4 }
  0x3d   :  { %867 = vmatpush.bf16.msra.mxu2 %v1332_v5  ;;  %880 = vmatpush.bf16.msra.mxu3 %v1340_v7 }
  0x3e   :  { %841 = vmatpush.bf16.msra.mxu0 %v1316_v6 }
  0x3f   :  { %854 = vmatpush.bf16.msra.mxu1 %v1324_v8  ;;  %v104_v8 = vperm.slane %v98_v49, 4 }
  0x41   :  { %868 = vmatpush.bf16.msra.mxu2 %v1331_v9  ;;  %881 = vmatpush.bf16.msra.mxu3 %v1339_v11  ;;  %v105_v11 = vperm.slane %v98_v49, 5 }
  0x42   :  { %842 = vmatpush.bf16.msra.mxu0 %v1315_v10 }
  0x43   :  { %855 = vmatpush.bf16.msra.mxu1 %v1323_v12 }
  0x45   :  { %869 = vmatpush.bf16.msra.mxu2 %v1330_v13  ;;  %882 = vmatpush.bf16.msra.mxu3 %v1338_v15 }
  0x46   :  { %843 = vmatpush.bf16.msra.mxu0 %v1314_v14 }
  0x47   :  { %856 = vmatpush.bf16.msra.mxu1 %v1322_v17  ;;  %v106_v17 = vperm.slane %v98_v49, 6 }
  0x49   :  { %914 = vmatpush.bf16.msrb.mxu2 %v1369_v19  ;;  %927 = vmatpush.bf16.msrb.mxu3 %v1377_v20 }
  0x4a   :  { %888 = vmatpush.bf16.msrb.mxu0 %v1353_v16 }
  0x4b   :  { %901 = vmatpush.bf16.msrb.mxu1 %v1361_v18  ;;  %v107_v18 = vperm.slane %v98_v49, 7 }
  0x4d   :  { %915 = vmatpush.bf16.msrb.mxu2 %v1368_v25  ;;  %928 = vmatpush.bf16.msrb.mxu3 %v1376_v26 }
  0x4e   :  { %889 = vmatpush.bf16.msrb.mxu0 %v1352_v21 }
  0x4f   :  { %902 = vmatpush.bf16.msrb.mxu1 %v1360_v22 }
  0x51   :  { %916 = vmatpush.bf16.msrb.mxu2 %v1367_v29  ;;  %929 = vmatpush.bf16.msrb.mxu3 %v1375_v30 }
  0x52   :  { %890 = vmatpush.bf16.msrb.mxu0 %v1351_v23 }
  0x53   :  { %903 = vmatpush.bf16.msrb.mxu1 %v1359_v24 }
  0x55   :  { %917 = vmatpush.bf16.msrb.mxu2 %v1366_v33  ;;  %930 = vmatpush.bf16.msrb.mxu3 %v1374_v34 }
  0x56   :  { %891 = vmatpush.bf16.msrb.mxu0 %v1350_v27 }
  0x57   :  { %904 = vmatpush.bf16.msrb.mxu1 %v1358_v28 }
  0x59   :  { %918 = vmatpush.bf16.msrb.mxu2 %v1365_v37  ;;  %931 = vmatpush.bf16.msrb.mxu3 %v1373_v38 }
  0x5a   :  { %892 = vmatpush.bf16.msrb.mxu0 %v1349_v31 }
  0x5b   :  { %905 = vmatpush.bf16.msrb.mxu1 %v1357_v32 }
  0x5d   :  { %919 = vmatpush.bf16.msrb.mxu2 %v1364_v41  ;;  %932 = vmatpush.bf16.msrb.mxu3 %v1372_v42 }
  0x5e   :  { %893 = vmatpush.bf16.msrb.mxu0 %v1348_v35 }
  0x5f   :  { %906 = vmatpush.bf16.msrb.mxu1 %v1356_v36  ;;  %v1387_v36 = vld [vmem:[%s1599_s4] ss:$0 sm:$0xff]  ;;  %s1528_s4 = smov [#allocation10]  }
  0x60   :  { %s956_s15 = sshll.u32 %s1528_s4, 4  ;;  %s957_s15 = int_to_ptr.vmem [resolvable:$true] %s956_s15 }
  0x61   :  { %920 = vmatpush.bf16.msrb.mxu2 %v1363_v45  ;;  %933 = vmatpush.bf16.msrb.mxu3 %v1371_v46 }
  0x62   :  { %894 = vmatpush.bf16.msrb.mxu0 %v1347_v39 }
  0x63   :  { %907 = vmatpush.bf16.msrb.mxu1 %v1355_v40 }
  0x65   :  { %921 = vmatpush.bf16.msrb.mxu2 %v1362_v47  ;;  %934 = vmatpush.bf16.msrb.mxu3 %v1370_v48 }
  0x66   :  { %895 = vmatpush.bf16.msrb.mxu0 %v1346_v43 }
  0x67   :  { %908 = vmatpush.bf16.msrb.mxu1 %v1354_v44 }
  0x9c   :  { %v209_v52 = vpop.f32.mrf.mxu0 }
  0x9d   :  { %v210_v53 = vadd.f32 %v209_v52, %v100_v50 }
  0x9f   :  { %v222_v54 = vpop.f32.mrf.mxu1  ;;  %v304_v55 = vmax.f32 %v210_v53, 0.0 }
  0xa0   :  { %v223_v56 = vadd.f32 %v222_v54, %v101_v51 }
  0xa1   :  { %v312_v59 = vpack.c.bf16 %v304_v55, %v304_v55 }
  0xa2   :  { %v305_v60 = vmax.f32 %v223_v56, 0.0 }
  0xa3   :  { %v235_v62 = vpop.f32.mrf.mxu2  ;;  %v248_v63 = vpop.f32.mrf.mxu3  ;;  %844 = vmatmul.bf16.vlgmr.msra.gmra.mxu0 %v312_v59 }
  0xa4   :  { %v313_v61 = vpack.c.bf16 %v305_v60, %v305_v60  ;;  %v236_v0 = vadd.f32 %v235_v62, %v102_v57  ;;  %v249_v1 = vadd.f32 %v248_v63, %v103_v58  ;;  %v211_v2 = vpop.f32.mrf.mxu0 }
  0xa6   :  { %857 = vmatmul.bf16.vlgmr.msra.gmra.mxu1 %v313_v61  ;;  %v306_v3 = vmax.f32 %v236_v0, 0.0  ;;  %v307_v4 = vmax.f32 %v249_v1, 0.0 }
  0xa7   :  { %v224_v5 = vpop.f32.mrf.mxu1 }
  0xa8   :  { %v314_v6 = vpack.c.bf16 %v306_v3, %v306_v3  ;;  %v315_v7 = vpack.c.bf16 %v307_v4, %v307_v4 }
  0xaa   :  { %870 = vmatmul.bf16.vlgmr.msra.gmra.mxu2 %v314_v6  ;;  %883 = vmatmul.bf16.vlgmr.msra.gmra.mxu3 %v315_v7 }
  0xab   :  { %v237_v9 = vpop.f32.mrf.mxu2  ;;  %v250_v10 = vpop.f32.mrf.mxu3 }
  0xac   :  { %v261_v12 = vpop.f32.mrf.mxu0 }
  0xad   :  { %v262_v13 = vadd.f32 %v261_v12, %v104_v8 }
  0xaf   :  { %v274_v14 = vpop.f32.mrf.mxu1  ;;  %v308_v15 = vmax.f32 %v262_v13, 0.0 }
  0xb0   :  { %v275_v16 = vadd.f32 %v274_v14, %v105_v11 }
  0xb1   :  { %v316_v19 = vpack.c.bf16 %v308_v15, %v308_v15 }
  0xb2   :  { %v309_v20 = vmax.f32 %v275_v16, 0.0 }
  0xb3   :  { %v287_v22 = vpop.f32.mrf.mxu2  ;;  %v300_v23 = vpop.f32.mrf.mxu3  ;;  %896 = vmatmul.bf16.vlgmr.msrb.gmra.mxu0 %v316_v19 }
  0xb4   :  { %v317_v21 = vpack.c.bf16 %v309_v20, %v309_v20  ;;  %v288_v24 = vadd.f32 %v287_v22, %v106_v17  ;;  %v301_v25 = vadd.f32 %v300_v23, %v107_v18  ;;  %v263_v26 = vpop.f32.mrf.mxu0 }
  0xb6   :  { %909 = vmatmul.bf16.vlgmr.msrb.gmra.mxu1 %v317_v21  ;;  %v310_v27 = vmax.f32 %v288_v24, 0.0  ;;  %v311_v28 = vmax.f32 %v301_v25, 0.0 }
  0xb7   :  { %v276_v29 = vpop.f32.mrf.mxu1 }
  0xb8   :  { %v318_v30 = vpack.c.bf16 %v310_v27, %v310_v27  ;;  %v319_v31 = vpack.c.bf16 %v311_v28, %v311_v28 }
  0xba   :  { %922 = vmatmul.bf16.vlgmr.msrb.gmra.mxu2 %v318_v30  ;;  %935 = vmatmul.bf16.vlgmr.msrb.gmra.mxu3 %v319_v31 }
  0xbb   :  { %v289_v32 = vpop.f32.mrf.mxu2  ;;  %v302_v33 = vpop.f32.mrf.mxu3 }
 0x120   :  { %v845_v34 = vpop.f32.mrf.mxu0 }
 0x121   :  { %v846_v37 = vadd.f32 %v1387_v36, %v845_v34 }
 0x123   :  { %v858_v35 = vpop.f32.mrf.mxu1 }
 0x124   :  { %v859_v40 = vadd.f32 %v858_v35, %v846_v37 }
 0x128   :  { %v847_v38 = vpop.f32.mrf.mxu0 }
 0x12b   :  { %v860_v39 = vpop.f32.mrf.mxu1 }
 0x12d   :  { %v871_v41 = vpop.f32.mrf.mxu2  ;;  %v884_v42 = vpop.f32.mrf.mxu3 }
 0x12e   :  { %v872_v43 = vadd.f32 %v871_v41, %v859_v40 }
 0x130   :  { %v897_v44 = vpop.f32.mrf.mxu0  ;;  %v885_v46 = vadd.f32 %v884_v42, %v872_v43 }
 0x132   :  { %v898_v49 = vadd.f32 %v897_v44, %v885_v46 }
 0x133   :  { %v910_v45 = vpop.f32.mrf.mxu1 }
 0x134   :  { %v911_v52 = vadd.f32 %v910_v45, %v898_v49 }
 0x135   :  { %v873_v47 = vpop.f32.mrf.mxu2  ;;  %v886_v48 = vpop.f32.mrf.mxu3 }
 0x138   :  { %v899_v50 = vpop.f32.mrf.mxu0 }
 0x13b   :  { %v912_v51 = vpop.f32.mrf.mxu1 }
 0x13d   :  { %v923_v53 = vpop.f32.mrf.mxu2  ;;  %v936_v54 = vpop.f32.mrf.mxu3 }
 0x13e   :  { %v924_v55 = vadd.f32 %v923_v53, %v911_v52 }
 0x140   :  { %v937_v56 = vadd.f32 %v936_v54, %v924_v55 }
 0x142   :  { %940 = vmax.xlane.f32.xlu0 %v937_v56 }
 0x145   :  { %v925_v57 = vpop.f32.mrf.mxu2  ;;  %v938_v58 = vpop.f32.mrf.mxu3 }
 0x1b5   :  { %v941_v59 = vpop.xlane.xlu0 %940 }
 0x1b6   :  { %v942_v60 = vsub.f32 %v937_v56, %v941_v59 }
 0x1b8   :  { %v943_v61 = vmul.f32 1.442695, %v942_v60 }
 0x1ba   :  { %1388 = vpow2.f32 %v943_v61 }
 0x1c0   :  { %v1389_v62 = vpop.eup %1388 }
 0x1c1   :  { %945 = vadd.xlane.f32.xlu0 %v1389_v62 }
 0x234   :  { %v946_v63 = vpop.xlane.xlu0 %945 }
 0x235   :  { %1390 = vlog2.f32 %v946_v63 }
 0x23b   :  { %v1391_v0 = vpop.eup %1390 }
 0x23c   :  { %v948_v1 = vmul.f32 0.6931472, %v1391_v0 }
 0x23e   :  { %v949_v2 = vsub.f32 %v942_v60, %v948_v1 }
 0x240   :  { %950 = vst [vmem:[#allocation10] sm:$0xff] %v949_v2 }
 0x241   :  { %961 = dma.vmem_to_hbm [thread:$0]  %s957_s15, 128, %s959_s18, [#allocation4]  }
 0x242   :  { %1518 = dma.done.wait [#allocation4], 128  }
 0x243   :  { %1519 = vsyncadd [#allocation4], 4294967168 }
 0x244   :  { %966 = vsyncpa [#allocation3], 1 }
 0x245   :  { %967 = vsyncpa [#allocation6], 1 }
 0x246   :  { %968 = vsyncpa [#allocation9], 1 }
 0x247   :  { %969 = vsyncpa [#allocation4], 1 }

</bundles_post_ra>
